<compile_context>
chip_gen: v5e
topology: v5e:2x2
jax: 0.10.0
libtpu: 0.0.40
codegen_flags: <defaults>
</compile_context>

<pallas_src>
import functools

import jax
import jax.numpy as jnp
from jax import lax
from jax.experimental import pallas as pl
from jax.experimental.pallas import tpu as pltpu


def basic_block_kernel(x_ref, bw_ref, sc_ref, o_ref, *, H):
    x = x_ref[...]                           # (M, W*C) lane-dense, M = Nb*H
    M = x.shape[0]

    # Per-image row-boundary masks.  Images are stacked contiguously along the
    # sublane axis in H-row chunks, so the rows where a sublane roll would
    # cross an image boundary (row % H == 0 / H-1) are exactly the rows that
    # must be zero for the SAME conv's H padding — one mask handles both.
    row = lax.broadcasted_iota(jnp.int32, (M, 1), 0) % H
    top_mask = row == 0
    bot_mask = row == H - 1

    def conv3x3(a, bw):
        # H-direction taps: XLU sublane rolls + VPU boundary masking.
        prev = jnp.where(top_mask, 0.0, pltpu.roll(a, shift=1, axis=0))
        nxt = jnp.where(bot_mask, 0.0, pltpu.roll(a, shift=M - 1, axis=0))
        # W-direction 3-tap conv is folded into the banded weight `bw`
        # (zero band == W padding); pack the three H taps along lanes so the
        # whole 3x3 conv is one K=3*W*C MXU matmul.
        taps = jnp.concatenate([prev, a, nxt], axis=-1)     # (M, 3*W*C)
        return jnp.dot(taps, bw, preferred_element_type=jnp.float32)

    s1 = sc_ref[0:1, :]
    t1 = sc_ref[1:2, :]
    s2 = sc_ref[2:3, :]
    t2 = sc_ref[3:4, :]

    a = jnp.maximum(x * s1 + t1, 0.0)        # BN1 + ReLU
    y = conv3x3(a, bw_ref[0])                # conv1 (3x3, stride 1, SAME)
    b = jnp.maximum(y * s2 + t2, 0.0)        # BN2 + ReLU
    # TODO(synk): Dropout(0.4) is identity in eval mode; training-mode random
    # mask (pltpu.prng_*) intentionally omitted to keep the forward deterministic.
    z = conv3x3(b, bw_ref[1])                # conv2 (3x3, stride 1, SAME)
    o_ref[...] = (z + x).astype(o_ref.dtype)  # identity residual


def _band_weights(w, W):
    """Lower a (3,3,Cin,Cout) HWIO conv weight to (3, W*Cin, W*Cout) banded
    matrices: B[dy][x_in*Cin+ci, x_out*Cout+co] = w[dy, x_in-x_out+1, ci, co]
    for |x_in - x_out| <= 1 and 0 otherwise (W-direction conv + zero pad)."""
    kh, kw, C, Co = w.shape
    xi = jnp.arange(W)
    xo = jnp.arange(W)
    dx = jnp.arange(kw)
    # S[d, x_in, x_out] = 1 iff x_in == x_out + d - 1
    S = (xi[None, :, None] ==
         (xo[None, None, :] + dx[:, None, None] - kw // 2)).astype(w.dtype)
    B = jnp.einsum('dio,hdcp->hicop', S, w)        # (kh, W, Cin, W, Cout)
    return B.reshape(kh, W * C, W * Co)


def _images_per_step(N, H, target_rows=256):
    """Largest divisor of N fusing enough images per grid step so the matmul
    row count Nb*H reaches ~target_rows (full MXU rows) when N allows."""
    best = 1
    for nb in range(1, N + 1):
        if N % nb == 0:
            best = nb
            if nb * H >= target_rows:
                break
    return best


def basic_block(x, w1, w2, s1, b1, s2, b2):
    """x: (N,H,W,C) f32; w: (3,3,Cin,Cout) HWIO; s*/b*: (C,) folded BN scale/shift."""
    N, H, W, C = x.shape
    Cout = w1.shape[3]
    assert Cout == C, "identity residual requires inplanes == planes, stride == 1"
    WC = W * C

    nb = _images_per_step(N, H)                    # images fused per grid step
    steps = N // nb
    rows = nb * H                                  # matmul M per step

    # Lane-dense layouts prepared once in the wrapper (cheap XLA reshapes).
    x2 = x.reshape(N * H, WC)
    # Packed banded weights: (2 convs, 3*WC, WC) — taps stacked along K.
    BW = jnp.stack([_band_weights(w1, W).reshape(3 * WC, WC),
                    _band_weights(w2, W).reshape(3 * WC, WC)])
    # Packed BN scale/shift: (4, WC) = [s1, t1, s2, t2] tiled over W.
    SC = jnp.stack([jnp.tile(s1, W), jnp.tile(b1, W),
                    jnp.tile(s2, W), jnp.tile(b2, W)])

    kernel = functools.partial(basic_block_kernel, H=H)
    out = pl.pallas_call(
        kernel,
        out_shape=jax.ShapeDtypeStruct((N * H, WC), x.dtype),
        grid_spec=pltpu.PrefetchScalarGridSpec(
            num_scalar_prefetch=0,
            grid=(steps,),
            in_specs=[
                pl.BlockSpec((rows, WC), lambda n: (n, 0)),
                pl.BlockSpec((2, 3 * WC, WC), lambda n: (0, 0, 0)),
                pl.BlockSpec((4, WC), lambda n: (0, 0)),
            ],
            out_specs=pl.BlockSpec((rows, WC), lambda n: (n, 0)),
        ),
        compiler_params=pltpu.CompilerParams(
            dimension_semantics=("parallel",)),
    )(x2, BW, SC)
    return out.reshape(N, H, W, Cout)


def reference(x, w1, w2, s1, b1, s2, b2):
    """Pure-JAX reference (NHWC / HWIO) for correctness check."""
    a = jnp.maximum(x * s1 + b1, 0.0)
    y = jax.lax.conv_general_dilated(
        a, w1, window_strides=(1, 1), padding="SAME",
        dimension_numbers=("NHWC", "HWIO", "NHWC"))
    b = jnp.maximum(y * s2 + b2, 0.0)
    z = jax.lax.conv_general_dilated(
        b, w2, window_strides=(1, 1), padding="SAME",
        dimension_numbers=("NHWC", "HWIO", "NHWC"))
    return z + x


if __name__ == "__main__":
    N, H, W, C = 2, 16, 16, 8          # inplanes = planes = 8, stride = 1
    key = jax.random.PRNGKey(0)
    ks = jax.random.split(key, 11)

    x = jax.random.normal(ks[0], (N, H, W, C), jnp.float32)

    # conv3x3 weights (HWIO), bias=False in conv3x3
    w1 = jax.random.normal(ks[1], (3, 3, C, C), jnp.float32) * 0.1
    w2 = jax.random.normal(ks[2], (3, 3, C, C), jnp.float32) * 0.1

    # BatchNorm params (gamma, beta, running_mean, running_var), eps = 1e-5
    eps = 1e-5
    g1 = jax.random.uniform(ks[3], (C,), minval=0.5, maxval=1.5)
    be1 = jax.random.normal(ks[4], (C,)) * 0.1
    m1 = jax.random.normal(ks[5], (C,)) * 0.1
    v1 = jax.random.uniform(ks[6], (C,), minval=0.5, maxval=1.5)
    g2 = jax.random.uniform(ks[7], (C,), minval=0.5, maxval=1.5)
    be2 = jax.random.normal(ks[8], (C,)) * 0.1
    m2 = jax.random.normal(ks[9], (C,)) * 0.1
    v2 = jax.random.uniform(ks[10], (C,), minval=0.5, maxval=1.5)

    # Fold BN into per-channel scale/shift: y = x*scale + shift
    s1 = g1 / jnp.sqrt(v1 + eps)
    b1 = be1 - m1 * s1
    s2 = g2 / jnp.sqrt(v2 + eps)
    b2 = be2 - m2 * s2

    out = basic_block(x, w1, w2, s1, b1, s2, b2)
    out = jax.block_until_ready(out)

    ref = reference(x, w1, w2, s1, b1, s2, b2)
    assert out.shape == (N, H, W, C) and out.dtype == jnp.float32
    assert jnp.allclose(out, ref, atol=1e-4, rtol=1e-4), "mismatch vs JAX reference"

    print("KERNEL_OK")
</pallas_src>

<mosaic_0001>
module attributes {stable_mosaic.version = 11 : i64} {
  func.func @basic_block_kernel(%arg0: i32, %arg1: memref<32x128xf32, #tpu.memory_space<vmem>>, %arg2: memref<2x384x128xf32, #tpu.memory_space<vmem>>, %arg3: memref<4x128xf32, #tpu.memory_space<vmem>>, %arg4: memref<32x128xf32, #tpu.memory_space<vmem>>) attributes {dimension_semantics = [#tpu.dimension_semantics<parallel>], iteration_bounds = array<i64: 1>, scalar_prefetch = 0 : i64, scratch_operands = 0 : i64, tpu.core_type = #tpu.core_type<tc>, window_params = [{transform_indices = @transform_0, window_bounds = array<i64: 32, 128>}, {pipeline_mode = #tpu.pipeline_mode<synchronous>, transform_indices = @transform_1, window_bounds = array<i64: 2, 384, 128>}, {pipeline_mode = #tpu.pipeline_mode<synchronous>, transform_indices = @transform_2, window_bounds = array<i64: 4, 128>}, {transform_indices = @transform_3, window_bounds = array<i64: 32, 128>}]} {
    %c0 = arith.constant 0 : index
    %c0_0 = arith.constant 0 : index
    %0 = vector.load %arg1[%c0, %c0_0] : memref<32x128xf32, #tpu.memory_space<vmem>>, vector<32x128xf32>
    %1 = tpu.iota {dimensions = array<i32: 0>} : vector<32x1xi32>
    %c16_i32 = arith.constant 16 : i32
    %c0_i32 = arith.constant 0 : i32
    %2 = arith.cmpi eq, %c16_i32, %c0_i32 : i32
    %c1_i32 = arith.constant 1 : i32
    %3 = arith.select %2, %c1_i32, %c16_i32 : i32
    %4 = vector.broadcast %3 : i32 to vector<32x1xi32>
    %5 = arith.remsi %1, %4 : vector<32x1xi32>
    %c0_i32_1 = arith.constant 0 : i32
    %6 = vector.broadcast %c0_i32_1 : i32 to vector<32x1xi32>
    %7 = arith.cmpi ne, %5, %6 : vector<32x1xi32>
    %c0_i32_2 = arith.constant 0 : i32
    %8 = vector.broadcast %c0_i32_2 : i32 to vector<32x1xi32>
    %9 = arith.cmpi slt, %5, %8 : vector<32x1xi32>
    %c0_i32_3 = arith.constant 0 : i32
    %10 = arith.cmpi slt, %3, %c0_i32_3 : i32
    %11 = vector.broadcast %10 : i1 to vector<32x1xi1>
    %12 = vector.broadcast %11 : vector<32x1xi1> to vector<32x1xi1>
    %13 = arith.xori %9, %12 : vector<32x1xi1>
    %14 = arith.andi %13, %7 : vector<32x1xi1>
    %15 = vector.broadcast %3 : i32 to vector<32x1xi32>
    %16 = arith.addi %5, %15 : vector<32x1xi32>
    %17 = arith.select %14, %16, %5 : vector<32x1xi1>, vector<32x1xi32>
    %c0_i32_4 = arith.constant 0 : i32
    %18 = vector.broadcast %c0_i32_4 : i32 to vector<32x1xi32>
    %19 = arith.cmpi eq, %17, %18 : vector<32x1xi32>
    %c15_i32 = arith.constant 15 : i32
    %20 = vector.broadcast %c15_i32 : i32 to vector<32x1xi32>
    %21 = arith.cmpi eq, %17, %20 : vector<32x1xi32>
    %c0_5 = arith.constant 0 : index
    %c0_6 = arith.constant 0 : index
    %22 = vector.load %arg3[%c0_5, %c0_6] : memref<4x128xf32, #tpu.memory_space<vmem>>, vector<1x128xf32>
    %c1 = arith.constant 1 : index
    %c0_7 = arith.constant 0 : index
    %23 = vector.load %arg3[%c1, %c0_7] : memref<4x128xf32, #tpu.memory_space<vmem>>, vector<1x128xf32>
    %c2 = arith.constant 2 : index
    %c0_8 = arith.constant 0 : index
    %24 = vector.load %arg3[%c2, %c0_8] : memref<4x128xf32, #tpu.memory_space<vmem>>, vector<1x128xf32>
    %c3 = arith.constant 3 : index
    %c0_9 = arith.constant 0 : index
    %25 = vector.load %arg3[%c3, %c0_9] : memref<4x128xf32, #tpu.memory_space<vmem>>, vector<1x128xf32>
    %26 = vector.broadcast %22 : vector<1x128xf32> to vector<32x128xf32>
    %27 = arith.mulf %0, %26 : vector<32x128xf32>
    %28 = vector.broadcast %23 : vector<1x128xf32> to vector<32x128xf32>
    %29 = arith.addf %27, %28 : vector<32x128xf32>
    %cst = arith.constant 0.000000e+00 : f32
    %30 = vector.broadcast %cst : f32 to vector<32x128xf32>
    %31 = arith.maximumf %29, %30 : vector<32x128xf32>
    %c0_10 = arith.constant 0 : index
    %c0_11 = arith.constant 0 : index
    %c0_12 = arith.constant 0 : index
    %32 = vector.load %arg2[%c0_10, %c0_11, %c0_12] : memref<2x384x128xf32, #tpu.memory_space<vmem>>, vector<1x384x128xf32>
    %33 = vector.shape_cast %32 : vector<1x384x128xf32> to vector<384x128xf32>
    %c1_i32_13 = arith.constant 1 : i32
    %34 = tpu.dynamic_rotate %31 by %c1_i32_13 dim 0 : vector<32x128xf32>, i32 -> vector<32x128xf32>
    %cst_14 = arith.constant 0.000000e+00 : f32
    %35 = vector.shape_cast %19 : vector<32x1xi1> to vector<32x1xi1>
    %36 = vector.broadcast %35 : vector<32x1xi1> to vector<32x128xi1>
    %37 = vector.broadcast %cst_14 : f32 to vector<32x128xf32>
    %38 = arith.select %36, %37, %34 : vector<32x128xi1>, vector<32x128xf32>
    %c31_i32 = arith.constant 31 : i32
    %39 = tpu.dynamic_rotate %31 by %c31_i32 dim 0 : vector<32x128xf32>, i32 -> vector<32x128xf32>
    %cst_15 = arith.constant 0.000000e+00 : f32
    %40 = vector.shape_cast %21 : vector<32x1xi1> to vector<32x1xi1>
    %41 = vector.broadcast %40 : vector<32x1xi1> to vector<32x128xi1>
    %42 = vector.broadcast %cst_15 : f32 to vector<32x128xf32>
    %43 = arith.select %41, %42, %39 : vector<32x128xi1>, vector<32x128xf32>
    %44 = tpu.concatenate %38, %31, %43 in 1 : vector<32x128xf32>, vector<32x128xf32>, vector<32x128xf32> -> vector<32x384xf32>
    %cst_16 = arith.constant dense<0.000000e+00> : vector<32x128xf32>
    %45 = tpu.matmul %44, %33, %cst_16 {dimension_numbers = #tpu.dot_dimension_numbers<[1], [0], [0], [1], [0, 0, 1, 1], [], []>} : vector<32x384xf32>, vector<384x128xf32>, vector<32x128xf32> -> vector<32x128xf32>
    %46 = vector.broadcast %24 : vector<1x128xf32> to vector<32x128xf32>
    %47 = arith.mulf %45, %46 : vector<32x128xf32>
    %48 = vector.broadcast %25 : vector<1x128xf32> to vector<32x128xf32>
    %49 = arith.addf %47, %48 : vector<32x128xf32>
    %cst_17 = arith.constant 0.000000e+00 : f32
    %50 = vector.broadcast %cst_17 : f32 to vector<32x128xf32>
    %51 = arith.maximumf %49, %50 : vector<32x128xf32>
    %c1_18 = arith.constant 1 : index
    %c0_19 = arith.constant 0 : index
    %c0_20 = arith.constant 0 : index
    %52 = vector.load %arg2[%c1_18, %c0_19, %c0_20] : memref<2x384x128xf32, #tpu.memory_space<vmem>>, vector<1x384x128xf32>
    %53 = vector.shape_cast %52 : vector<1x384x128xf32> to vector<384x128xf32>
    %c1_i32_21 = arith.constant 1 : i32
    %54 = tpu.dynamic_rotate %51 by %c1_i32_21 dim 0 : vector<32x128xf32>, i32 -> vector<32x128xf32>
    %cst_22 = arith.constant 0.000000e+00 : f32
    %55 = vector.shape_cast %19 : vector<32x1xi1> to vector<32x1xi1>
    %56 = vector.broadcast %55 : vector<32x1xi1> to vector<32x128xi1>
    %57 = vector.broadcast %cst_22 : f32 to vector<32x128xf32>
    %58 = arith.select %56, %57, %54 : vector<32x128xi1>, vector<32x128xf32>
    %c31_i32_23 = arith.constant 31 : i32
    %59 = tpu.dynamic_rotate %51 by %c31_i32_23 dim 0 : vector<32x128xf32>, i32 -> vector<32x128xf32>
    %cst_24 = arith.constant 0.000000e+00 : f32
    %60 = vector.shape_cast %21 : vector<32x1xi1> to vector<32x1xi1>
    %61 = vector.broadcast %60 : vector<32x1xi1> to vector<32x128xi1>
    %62 = vector.broadcast %cst_24 : f32 to vector<32x128xf32>
    %63 = arith.select %61, %62, %59 : vector<32x128xi1>, vector<32x128xf32>
    %64 = tpu.concatenate %58, %51, %63 in 1 : vector<32x128xf32>, vector<32x128xf32>, vector<32x128xf32> -> vector<32x384xf32>
    %cst_25 = arith.constant dense<0.000000e+00> : vector<32x128xf32>
    %65 = tpu.matmul %64, %53, %cst_25 {dimension_numbers = #tpu.dot_dimension_numbers<[1], [0], [0], [1], [0, 0, 1, 1], [], []>} : vector<32x384xf32>, vector<384x128xf32>, vector<32x128xf32> -> vector<32x128xf32>
    %66 = arith.addf %65, %0 : vector<32x128xf32>
    %c0_26 = arith.constant 0 : index
    %c0_27 = arith.constant 0 : index
    %67 = vector.load %arg4[%c0_26, %c0_27] : memref<32x128xf32, #tpu.memory_space<vmem>>, vector<32x128xf32>
    tpu.vector_store %arg4[%c0_26, %c0_27], %66 {strides = array<i32>} : memref<32x128xf32, #tpu.memory_space<vmem>>, vector<32x128xf32>,
    return
  }
  func.func @transform_0(%arg0: i32) -> (i32, i32) {
    %c0_i32 = arith.constant 0 : i32
    %c0_i32_0 = arith.constant 0 : i32
    return %arg0, %c0_i32 : i32, i32
  }
  func.func @transform_1(%arg0: i32) -> (i32, i32, i32) {
    %c0_i32 = arith.constant 0 : i32
    %c0_i32_0 = arith.constant 0 : i32
    %c0_i32_1 = arith.constant 0 : i32
    %c0_i32_2 = arith.constant 0 : i32
    return %c0_i32, %c0_i32_0, %c0_i32_1 : i32, i32, i32
  }
  func.func @transform_2(%arg0: i32) -> (i32, i32) {
    %c0_i32 = arith.constant 0 : i32
    %c0_i32_0 = arith.constant 0 : i32
    %c0_i32_1 = arith.constant 0 : i32
    return %c0_i32, %c0_i32_0 : i32, i32
  }
  func.func @transform_3(%arg0: i32) -> (i32, i32) {
    %c0_i32 = arith.constant 0 : i32
    %c0_i32_0 = arith.constant 0 : i32
    return %arg0, %c0_i32 : i32, i32
  }
}

</mosaic_0001>

<bundles_post_ra>
// kernel: tpu_custom_call.1
= control target key start
LH: loop header
LB: loop body
LE: loop exit
PB: predicated region body
PF: predicated region fallthrough
CT: control target
= control target key end

     0   :  { %8 = vsyncpa [#allocation3], 0  ;;  %s914_s0 = inlined_call_operand.hbm [shape: f32[32,128], index: 0, kind: input, shape index: {}]   ;;  %s915_s1 = inlined_call_operand.hbm [shape: f32[2,384,128], index: 1, kind: input, shape index: {}]   ;;  %s916_s2 = inlined_call_operand.hbm [shape: f32[4,128], index: 2, kind: input, shape index: {}]   ;;  %s917_s3 = inlined_call_operand.hbm [shape: f32[32,128], index: 3, kind: output, shape index: {}]  }
   0x1   :  { %9 = vsyncpa [#allocation6], 0 }
   0x2   :  { %10 = vsyncpa [#allocation4], 0  ;;  %s28_s14 = sshll.u32 %s915_s1, 4  ;;  %s682_s15 = smov [#allocation5]   ;;  %s29_s14 = int_to_ptr.hbm [resolvable:$true] %s28_s14 }
   0x3   :  { %s30_s16 = sshll.u32 %s682_s15, 4  ;;  %s15_s19 = sshll.u32 %s914_s0, 4  ;;  %s31_s16 = int_to_ptr.vmem [resolvable:$true] %s30_s16  ;;  %s16_s19 = int_to_ptr.hbm [resolvable:$true] %s15_s19 }
   0x4   :  { %s683_s20 = smov 128   ;;  %s684_s21 = smov 8  }
   0x5   :  { %36 = dma.hbm_to_vmem [thread:$0]  %s29_s14, 12288, %s31_s16, [#allocation6], %s683_s20, %s683_s20, %s684_s21  }
   0x6   :  { %s685_s22 = smov [#allocation2]   ;;  %s42_s1 = sshll.u32 %s916_s2, 4  ;;  %s43_s1 = int_to_ptr.hbm [resolvable:$true] %s42_s1 }
   0x7   :  { %s17_s23 = sshll.u32 %s685_s22, 4  ;;  %s686_s0 = smov [#allocation7]   ;;  %s18_s23 = int_to_ptr.vmem [resolvable:$true] %s17_s23 }
   0x8   :  { %23 = dma.hbm_to_vmem [thread:$0]  %s16_s19, 512, %s18_s23, [#allocation3], %s683_s20, %s683_s20, %s684_s21  }
   0x9   :  { %s44_s26 = sshll.u32 %s686_s0, 4  ;;  %s45_s26 = int_to_ptr.vmem [resolvable:$true] %s44_s26 }
   0xa   :  { %47 = dma.hbm_to_vmem [thread:$0]  %s43_s1, 64, %s45_s26, [#allocation6]  }
   0xb   :  { %676 = dma.done.wait [#allocation3], 512  }
   0xc   :  { %677 = vsyncadd [#allocation3], 4294966784 }
   0xd   :  { %678 = dma.done.wait [#allocation6], 12352  }
   0xe   :  { %679 = vsyncadd [#allocation6], 4294954944  ;;  %v190_v0 = vld [vmem:[#allocation5 + $0x178] sm:$0xff]  ;;  %v189_v1 = vld [vmem:[#allocation5 + $0x170] sm:$0xff]  ;;  %v64_v36 = vlaneseq  ;;  %s687_s2 = smov [#allocation8]   ;;  %s504_s30 = sshll.u32 %s917_s3, 4  ;;  %s505_s30 = int_to_ptr.hbm [resolvable:$true] %s504_s30 }
   0xf   :  { %v158_v2 = vld [vmem:[#allocation5 + $0x78] sm:$0xff]  ;;  %291 = vmatpush.msra.mxu2 %v190_v0  ;;  %v157_v4 = vld [vmem:[#allocation5 + $0x70] sm:$0xff]  ;;  %v188_v5 = vld [vmem:[#allocation5 + $0x168] sm:$0xff]  ;;  %s502_s27 = sshll.u32 %s687_s2, 4  ;;  %s503_s27 = int_to_ptr.vmem [resolvable:$true] %s502_s27 }
  0x10   :  { %233 = vmatpush.msra.mxu0 %v158_v2  ;;  %v174_v3 = vld [vmem:[#allocation5 + $0xf8] sm:$0xff]  ;;  %v173_v6 = vld [vmem:[#allocation5 + $0xf0] sm:$0xff]  ;;  %v156_v7 = vld [vmem:[#allocation5 + $0x68] sm:$0xff]  ;;  %v735_v52 = vshrl.u32 %v64_v36, 7 }
  0x11   :  { %262 = vmatpush.msra.mxu1 %v174_v3  ;;  %292 = vmatpush.msra.mxu2 %v189_v1  ;;  %v172_v8 = vld [vmem:[#allocation5 + $0xe8] sm:$0xff]  ;;  %v187_v9 = vld [vmem:[#allocation5 + $0x160] sm:$0xff]  ;;  %v186_v12 = vld [vmem:[#allocation5 + $0x158] sm:$0xff] }
  0x12   :  { %234 = vmatpush.msra.mxu0 %v157_v4  ;;  %v155_v10 = vld [vmem:[#allocation5 + $0x60] sm:$0xff]  ;;  %v154_v13 = vld [vmem:[#allocation5 + $0x58] sm:$0xff]  ;;  %v185_v15 = vld [vmem:[#allocation5 + $0x150] sm:$0xff]  ;;  %vm216_vm0 = vcmp.lt.s32.totalorder %v735_v52, 7  ;;  %v73_v1 = vand.u32 15, %v735_v52  ;;  %vm195_vm1 = vcmp.lt.s32.totalorder %v735_v52, 1 }
  0x13   :  { %263 = vmatpush.msra.mxu1 %v173_v6  ;;  %293 = vmatpush.msra.mxu2 %v188_v5  ;;  %v171_v11 = vld [vmem:[#allocation5 + $0xe0] sm:$0xff]  ;;  %v170_v14 = vld [vmem:[#allocation5 + $0xd8] sm:$0xff]  ;;  %v153_v16 = vld [vmem:[#allocation5 + $0x50] sm:$0xff] }
  0x14   :  { %235 = vmatpush.msra.mxu0 %v156_v7  ;;  %v169_v17 = vld [vmem:[#allocation5 + $0xd0] sm:$0xff]  ;;  %v184_v18 = vld [vmem:[#allocation5 + $0x148] sm:$0xff]  ;;  %v183_v21 = vld [vmem:[#allocation5 + $0x140] sm:$0xff]  ;;  %vm761_vm2 = vcmp.ne.s32.totalorder %v73_v1, 0 }
  0x15   :  { %264 = vmatpush.msra.mxu1 %v172_v8  ;;  %294 = vmatpush.msra.mxu2 %v187_v9  ;;  %v152_v19 = vld [vmem:[#allocation5 + $0x48] sm:$0xff]  ;;  %v151_v22 = vld [vmem:[#allocation5 + $0x40] sm:$0xff]  ;;  %v182_v23 = vld [vmem:[#allocation5 + $0x138] sm:$0xff]  ;;  %v66_v9 = vadd.s32 8, %v735_v52 }
  0x16   :  { %236 = vmatpush.msra.mxu0 %v155_v10  ;;  %v168_v20 = vld [vmem:[#allocation5 + $0xc8] sm:$0xff]  ;;  %v167_v24 = vld [vmem:[#allocation5 + $0xc0] sm:$0xff]  ;;  %v181_v25 = vld [vmem:[#allocation5 + $0x130] sm:$0xff] }
  0x17   :  { %265 = vmatpush.msra.mxu1 %v171_v11  ;;  %295 = vmatpush.msra.mxu2 %v186_v12  ;;  %v150_v26 = vld [vmem:[#allocation5 + $0x38] sm:$0xff]  ;;  %v723_v28 = vld [vmem:[#allocation2] sm:$0xff]  ;;  %v725_v29 = vld [vmem:[#allocation2 + $0x8] sm:$0xff] }
  0x18   :  { %237 = vmatpush.msra.mxu0 %v154_v13  ;;  %v166_v27 = vld [vmem:[#allocation5 + $0xb8] sm:$0xff]  ;;  %v149_v30 = vld [vmem:[#allocation5 + $0x30] sm:$0xff]  ;;  %v576_v31 = vld [vmem:[#allocation7] ss:$0 sm:$0xff] }
  0x19   :  { %266 = vmatpush.msra.mxu1 %v170_v14  ;;  %296 = vmatpush.msra.mxu2 %v185_v15  ;;  %v577_v32 = vld [vmem:[#allocation7 + $0x1] ss:$0 sm:$0xff]  ;;  %v180_v33 = vld [vmem:[#allocation5 + $0x128] sm:$0xff]  ;;  %v165_v34 = vld [vmem:[#allocation5 + $0xb0] sm:$0xff]  ;;  %v130_v37 = vmul.f32 %v576_v31, %v723_v28  ;;  %v131_v38 = vmul.f32 %v576_v31, %v725_v29  ;;  %v80_v15 = vand.u32 15, %v66_v9 }
  0x1a   :  { %238 = vmatpush.msra.mxu0 %v153_v16  ;;  %v148_v35 = vld [vmem:[#allocation5 + $0x28] sm:$0xff]  ;;  %v729_v39 = vld [vmem:[#allocation2 + $0x18] sm:$0xff]  ;;  %v731_v40 = vld [vmem:[#allocation2 + $0x10] sm:$0xff] }
  0x1b   :  { %267 = vmatpush.msra.mxu1 %v169_v17  ;;  %297 = vmatpush.msra.mxu2 %v184_v18  ;;  %v164_v41 = vld [vmem:[#allocation5 + $0xa8] sm:$0xff]  ;;  %v133_v42 = vmul.f32 %v576_v31, %v729_v39  ;;  %v179_v43 = vld [vmem:[#allocation5 + $0x120] sm:$0xff]  ;;  %v135_v45 = vadd.f32 %v577_v32, %v130_v37  ;;  %v136_v46 = vadd.f32 %v577_v32, %v131_v38  ;;  %v178_v50 = vld [vmem:[#allocation5 + $0x118] sm:$0xff]  ;;  %vm780_vm3 = vcmp.ne.s32.totalorder %v80_v15, 15 }
  0x1c   :  { %239 = vmatpush.msra.mxu0 %v152_v19  ;;  %v147_v44 = vld [vmem:[#allocation5 + $0x20] sm:$0xff]  ;;  %v132_v49 = vmul.f32 %v576_v31, %v731_v40  ;;  %v146_v51 = vld [vmem:[#allocation5 + $0x18] sm:$0xff]  ;;  %v177_v57 = vld [vmem:[#allocation5 + $0x110] sm:$0xff]  ;;  %v68_v38 = vadd.s32 24, %v735_v52 }
  0x1d   :  { %268 = vmatpush.msra.mxu1 %v168_v20  ;;  %298 = vmatpush.msra.mxu2 %v183_v21  ;;  %v163_v47 = vld [vmem:[#allocation5 + $0xa0] sm:$0xff]  ;;  %v138_v48 = vadd.f32 %v577_v32, %v133_v42  ;;  %v737_v53 = vmax.f32 %v135_v45, 0.0  ;;  %v739_v54 = vmax.f32 %v136_v46, 0.0  ;;  %v162_v55 = vld [vmem:[#allocation5 + $0x98] sm:$0xff]  ;;  %v145_v58 = vld [vmem:[#allocation5 + $0x10] sm:$0xff] }
  0x1e   :  { %240 = vmatpush.msra.mxu0 %v151_v22  ;;  %v161_v59 = vld [vmem:[#allocation5 + $0x90] sm:$0xff]  ;;  %v137_v62 = vadd.f32 %v577_v32, %v132_v49  ;;  %v176_v63 = vld [vmem:[#allocation5 + $0x108] sm:$0xff]  ;;  %v175_v5 = vld [vmem:[#allocation5 + $0x100] sm:$0xff]  ;;  %v94_v45 = vand.u32 15, %v68_v38 }
  0x1f   :  { %269 = vmatpush.msra.mxu1 %v167_v24  ;;  %299 = vmatpush.msra.mxu2 %v182_v23  ;;  %v741_v56 = vmax.f32 %v138_v48, 0.0  ;;  %v212_v60 = vrot.slane %v737_v53, 1  ;;  %v213_v61 = vrot.slane %v739_v54, 1  ;;  %v144_v0 = vld [vmem:[#allocation5 + $0x8] sm:$0xff]  ;;  %v191_v2 = vrot.slane %v737_v53, 7  ;;  %v143_v6 = vld [vmem:[#allocation5] sm:$0xff] }
  0x20   :  { %241 = vmatpush.msra.mxu0 %v150_v26  ;;  %v160_v4 = vld [vmem:[#allocation5 + $0x88] sm:$0xff]  ;;  %v159_v8 = vld [vmem:[#allocation5 + $0x80] sm:$0xff]  ;;  %v755_v10 = vmax.f32 %v137_v62, 0.0  ;;  %v366_v13 = vld [vmem:[#allocation5 + $0x278] sm:$0xff]  ;;  %v192_v19 = vrot.slane %v739_v54, 7  ;;  %v67_v26 = vadd.s32 16, %v735_v52 }
  0x21   :  { %270 = vmatpush.msra.mxu1 %v166_v27  ;;  %300 = vmatpush.msra.mxu2 %v181_v25  ;;  %v194_v3 = vrot.slane %v741_v56, 7  ;;  %v219_v7 = vsel %vm216_vm0, %v212_v60, %v213_v61  ;;  %v765_v14 = vld [vmem:[#allocation5 + $0x2f8] sm:$0xff]  ;;  %v365_v17 = vld [vmem:[#allocation5 + $0x270] sm:$0xff]  ;;  %v364_v20 = vld [vmem:[#allocation5 + $0x268] sm:$0xff]  ;;  %v215_v31 = vrot.slane %v741_v56, 1  ;;  %vm815_vm5 = vcmp.ne.s32.totalorder %v94_v45, 15 }
  0x22   :  { %242 = vmatpush.msra.mxu0 %v149_v30  ;;  %v214_v16 = vrot.slane %v755_v10, 1  ;;  %v771_v18 = vld [vmem:[#allocation5 + $0x2f0] sm:$0xff]  ;;  %v775_v21 = vld [vmem:[#allocation5 + $0x2e8] sm:$0xff]  ;;  %v363_v24 = vld [vmem:[#allocation5 + $0x260] sm:$0xff]  ;;  %v198_v25 = vsel %vm195_vm1, %v191_v2, %v192_v19 }
  0x23   :  { %271 = vmatpush.msra.mxu1 %v165_v34  ;;  %301 = vmatpush.msra.mxu2 %v180_v33  ;;  %v199_v11 = vsel %vm195_vm1, %v194_v3, %v191_v2  ;;  %v362_v27 = vld [vmem:[#allocation5 + $0x258] sm:$0xff]  ;;  %v788_v30 = vld [vmem:[#allocation5 + $0x2e0] sm:$0xff]  ;;  %v361_v32 = vld [vmem:[#allocation5 + $0x250] sm:$0xff]  ;;  %v87_v34 = vand.u32 15, %v67_v26 }
  0x24   :  { %243 = vmatpush.msra.mxu0 %v148_v35  ;;  %v218_v22 = vsel %vm216_vm0, %v213_v61, %v214_v16  ;;  %v794_v33 = vld [vmem:[#allocation5 + $0x2d8] sm:$0xff]  ;;  %v193_v35 = vrot.slane %v755_v10, 7  ;;  %v360_v36 = vld [vmem:[#allocation5 + $0x248] sm:$0xff]  ;;  %v217_v37 = vsel %vm216_vm0, %v214_v16, %v215_v31  ;;  %v357_v46 = vld [vmem:[#allocation5 + $0x230] sm:$0xff] }
  0x25   :  { %272 = vmatpush.msra.mxu1 %v164_v41  ;;  %302 = vmatpush.msra.mxu2 %v179_v43  ;;  %v359_v41 = vld [vmem:[#allocation5 + $0x240] sm:$0xff]  ;;  %vm804_vm4 = vcmp.ne.s32.totalorder %v87_v34, 0  ;;  %v349_v61 = vld [vmem:[#allocation5 + $0x1f0] sm:$0xff]  ;;  %v841_v1 = vld [vmem:[#allocation5 + $0x2a8] sm:$0xff] }
  0x26   :  { %244 = vmatpush.msra.mxu0 %v147_v44  ;;  %v197_v42 = vsel %vm195_vm1, %v192_v19, %v193_v35  ;;  %v358_v44 = vld [vmem:[#allocation5 + $0x238] sm:$0xff]  ;;  %v196_v49 = vsel %vm195_vm1, %v193_v35, %v194_v3  ;;  %v837_v62 = vld [vmem:[#allocation5 + $0x2b0] sm:$0xff]  ;;  %v347_v2 = vld [vmem:[#allocation5 + $0x1e0] sm:$0xff] }
  0x27   :  { %273 = vmatpush.msra.mxu1 %v163_v47  ;;  %303 = vmatpush.msra.mxu2 %v178_v50  ;;  %v220_v47 = vsel %vm216_vm0, %v215_v31, %v212_v60  ;;  %v356_v50 = vld [vmem:[#allocation5 + $0x228] sm:$0xff]  ;;  %v844_v3 = vld [vmem:[#allocation5 + $0x2a0] sm:$0xff]  ;;  %v341_v15 = vld [vmem:[#allocation5 + $0x1b0] sm:$0xff] }
  0x28   :  { %245 = vmatpush.msra.mxu0 %v146_v51  ;;  %v826_v51 = vld [vmem:[#allocation5 + $0x2d0] sm:$0xff]  ;;  %v352_v60 = vld [vmem:[#allocation5 + $0x208] sm:$0xff]  ;;  %v579_v34 = vld [vmem:[#allocation7 + $0x3] ss:$0 sm:$0xff] }
  0x29   :  { %274 = vmatpush.msra.mxu1 %v162_v55  ;;  %304 = vmatpush.msra.mxu2 %v177_v57  ;;  %v354_v55 = vld [vmem:[#allocation5 + $0x218] sm:$0xff]  ;;  %v832_v57 = vld [vmem:[#allocation5 + $0x2c0] sm:$0xff]  ;;  %v853_v9 = vld [vmem:[#allocation5 + $0x288] sm:$0xff] }
  0x2a   :  { %246 = vmatpush.msra.mxu0 %v145_v58  ;;  %v350_v58 = vld [vmem:[#allocation5 + $0x1f8] sm:$0xff]  ;;  %v340_v16 = vld [vmem:[#allocation5 + $0x1a8] sm:$0xff]  ;;  %v335_v35 = vld [vmem:[#allocation5 + $0x180] sm:$0xff] }
  0x2b   :  { %275 = vmatpush.msra.mxu1 %v161_v59  ;;  %305 = vmatpush.msra.mxu2 %v176_v63  ;;  %v835_v59 = vld [vmem:[#allocation5 + $0x2b8] sm:$0xff]  ;;  %v351_v63 = vld [vmem:[#allocation5 + $0x200] sm:$0xff]  ;;  %v336_v26 = vld [vmem:[#allocation5 + $0x188] sm:$0xff] }
  0x2c   :  { %247 = vmatpush.msra.mxu0 %v144_v0  ;;  %407 = vmatpush.msra.mxu3 %v350_v58  ;;  %v348_v0 = vld [vmem:[#allocation5 + $0x1e8] sm:$0xff] }
  0x2d   :  { %276 = vmatpush.msra.mxu1 %v160_v4  ;;  %306 = vmatpush.msra.mxu2 %v175_v5  ;;  %v346_v4 = vld [vmem:[#allocation5 + $0x1d8] sm:$0xff] }
  0x2e   :  { %248 = vmatpush.msra.mxu0 %v143_v6  ;;  %307 = vmatmul.f32.vlgmr.msra.gmra.mxu2 %v219_v7  ;;  %v847_v5 = vld [vmem:[#allocation5 + $0x298] sm:$0xff]  ;;  %v345_v6 = vld [vmem:[#allocation5 + $0x1d0] sm:$0xff] }
  0x2f   :  { %277 = vmatpush.msra.mxu1 %v159_v8  ;;  %519 = vmatmul.msk.f32.vlgmr.msra.gmra.mxu0 %vm761_vm2, %v199_v11  ;;  %v849_v7 = vld [vmem:[#allocation5 + $0x290] sm:$0xff]  ;;  %v344_v8 = vld [vmem:[#allocation5 + $0x1c8] sm:$0xff]  ;;  %v856_v11 = vld [vmem:[#allocation5 + $0x280] sm:$0xff] }
  0x30   :  { %278 = vmatmul.f32.vlgmr.msra.gmra.mxu1 %v737_v53  ;;  %436 = vmatpush.msrb.mxu0 %v366_v13  ;;  %v355_v53 = vld [vmem:[#allocation5 + $0x220] sm:$0xff] }
  0x31   :  { %465 = vmatpush.msrb.mxu1 %v765_v14  ;;  %538 = vmatpush.msrb.mxu2 %v366_v13  ;;  %v342_v13 = vld [vmem:[#allocation5 + $0x1b8] sm:$0xff] }
  0x32   :  { %437 = vmatpush.msrb.mxu0 %v365_v17  ;;  %408 = vmatpush.msra.mxu3 %v349_v61 }
  0x33   :  { %466 = vmatpush.msrb.mxu1 %v771_v18  ;;  %539 = vmatpush.msrb.mxu2 %v365_v17  ;;  %v339_v17 = vld [vmem:[#allocation5 + $0x1a0] sm:$0xff] }
  0x34   :  { %438 = vmatpush.msrb.mxu0 %v364_v20  ;;  %409 = vmatpush.msra.mxu3 %v348_v0 }
  0x35   :  { %467 = vmatpush.msrb.mxu1 %v775_v21  ;;  %540 = vmatpush.msrb.mxu2 %v364_v20 }
  0x36   :  { %523 = vmatmul.msk.f32.gmra.mxu2 %vm780_vm3, %v218_v22  ;;  %439 = vmatpush.msrb.mxu0 %v363_v24  ;;  %v338_v22 = vld [vmem:[#allocation5 + $0x198] sm:$0xff] }
  0x37   :  { %252 = vmatmul.f32.gmra.mxu0 %v198_v25  ;;  %468 = vmatpush.msrb.mxu1 %v788_v30 }
  0x38   :  { %281 = vmatmul.f32.gmra.mxu1 %v739_v54  ;;  %440 = vmatpush.msrb.mxu0 %v362_v27  ;;  %v829_v54 = vld [vmem:[#allocation5 + $0x2c8] sm:$0xff] }
  0x39   :  { %541 = vmatpush.msrb.mxu2 %v363_v24  ;;  %469 = vmatpush.msrb.mxu1 %v794_v33  ;;  %v337_v24 = vld [vmem:[#allocation5 + $0x190] sm:$0xff] }
  0x3a   :  { %441 = vmatpush.msrb.mxu0 %v361_v32  ;;  %410 = vmatpush.msra.mxu3 %v347_v2 }
  0x3b   :  { %542 = vmatpush.msrb.mxu2 %v362_v27  ;;  %470 = vmatpush.msrb.mxu1 %v826_v51  ;;  %v578_v27 = vld [vmem:[#allocation7 + $0x2] ss:$0 sm:$0xff] }
  0x3c   :  { %442 = vmatpush.msrb.mxu0 %v360_v36  ;;  %411 = vmatpush.msra.mxu3 %v346_v4 }
  0x3d   :  { %543 = vmatpush.msrb.mxu2 %v361_v32  ;;  %471 = vmatpush.msrb.mxu1 %v829_v54 }
  0x3e   :  { %313 = vmatmul.f32.gmra.mxu2 %v217_v37  ;;  %443 = vmatpush.msrb.mxu0 %v359_v41 }
  0x3f   :  { %521 = vmatmul.msk.f32.gmra.mxu0 %vm804_vm4, %v197_v42  ;;  %544 = vmatpush.msrb.mxu2 %v360_v36 }
  0x40   :  { %284 = vmatmul.f32.gmra.mxu1 %v755_v10  ;;  %444 = vmatpush.msrb.mxu0 %v358_v44  ;;  %v343_v10 = vld [vmem:[#allocation5 + $0x1c0] sm:$0xff] }
  0x41   :  { %545 = vmatpush.msrb.mxu2 %v359_v41  ;;  %472 = vmatpush.msrb.mxu1 %v832_v57 }
  0x42   :  { %445 = vmatpush.msrb.mxu0 %v357_v46  ;;  %412 = vmatpush.msra.mxu3 %v345_v6 }
  0x43   :  { %546 = vmatpush.msrb.mxu2 %v358_v44  ;;  %473 = vmatpush.msrb.mxu1 %v835_v59 }
  0x44   :  { %446 = vmatpush.msrb.mxu0 %v356_v50  ;;  %413 = vmatpush.msra.mxu3 %v344_v8 }
  0x45   :  { %547 = vmatpush.msrb.mxu2 %v357_v46  ;;  %474 = vmatpush.msrb.mxu1 %v837_v62 }
  0x46   :  { %525 = vmatmul.msk.f32.gmra.mxu2 %vm815_vm5, %v220_v47  ;;  %447 = vmatpush.msrb.mxu0 %v355_v53 }
  0x47   :  { %258 = vmatmul.f32.gmra.mxu0 %v196_v49  ;;  %548 = vmatpush.msrb.mxu2 %v356_v50 }
  0x48   :  { %287 = vmatmul.f32.gmra.mxu1 %v741_v56  ;;  %448 = vmatpush.msrb.mxu0 %v354_v55  ;;  %v353_v56 = vld [vmem:[#allocation5 + $0x210] sm:$0xff] }
  0x49   :  { %549 = vmatpush.msrb.mxu2 %v355_v53  ;;  %475 = vmatpush.msrb.mxu1 %v841_v1 }
  0x4a   :  { %449 = vmatpush.msrb.mxu0 %v353_v56  ;;  %414 = vmatpush.msra.mxu3 %v343_v10 }
  0x4b   :  { %550 = vmatpush.msrb.mxu2 %v354_v55  ;;  %476 = vmatpush.msrb.mxu1 %v844_v3 }
  0x4c   :  { %450 = vmatpush.msrb.mxu0 %v352_v60  ;;  %415 = vmatpush.msra.mxu3 %v342_v13 }
  0x4d   :  { %551 = vmatpush.msrb.mxu2 %v353_v56  ;;  %477 = vmatpush.msrb.mxu1 %v847_v5 }
  0x4e   :  { %451 = vmatpush.msrb.mxu0 %v351_v63  ;;  %416 = vmatpush.msra.mxu3 %v341_v15 }
  0x4f   :  { %552 = vmatpush.msrb.mxu2 %v352_v60  ;;  %478 = vmatpush.msrb.mxu1 %v849_v7 }
  0x50   :  { %417 = vmatpush.msra.mxu3 %v340_v16 }
  0x51   :  { %553 = vmatpush.msrb.mxu2 %v351_v63  ;;  %479 = vmatpush.msrb.mxu1 %v853_v9 }
  0x52   :  { %418 = vmatpush.msra.mxu3 %v339_v17 }
  0x53   :  { %480 = vmatpush.msrb.mxu1 %v856_v11 }
  0x54   :  { %419 = vmatpush.msra.mxu3 %v338_v22 }
  0x56   :  { %420 = vmatpush.msra.mxu3 %v337_v24 }
  0x58   :  { %421 = vmatpush.msra.mxu3 %v336_v26 }
  0x5a   :  { %422 = vmatpush.msra.mxu3 %v335_v35 }
  0x5c   :  { %554 = vmatpush.msrb.mxu3 %v765_v14 }
  0x5e   :  { %555 = vmatpush.msrb.mxu3 %v771_v18 }
  0x60   :  { %556 = vmatpush.msrb.mxu3 %v775_v21 }
  0x62   :  { %557 = vmatpush.msrb.mxu3 %v788_v30 }
  0x64   :  { %558 = vmatpush.msrb.mxu3 %v794_v33 }
  0x66   :  { %559 = vmatpush.msrb.mxu3 %v826_v51 }
  0x68   :  { %560 = vmatpush.msrb.mxu3 %v829_v54 }
  0x6a   :  { %561 = vmatpush.msrb.mxu3 %v832_v57 }
  0x6c   :  { %562 = vmatpush.msrb.mxu3 %v835_v59 }
  0x6e   :  { %563 = vmatpush.msrb.mxu3 %v837_v62 }
  0x70   :  { %564 = vmatpush.msrb.mxu3 %v841_v1 }
  0x72   :  { %565 = vmatpush.msrb.mxu3 %v844_v3 }
  0x74   :  { %566 = vmatpush.msrb.mxu3 %v847_v5 }
  0x76   :  { %567 = vmatpush.msrb.mxu3 %v849_v7 }
  0x78   :  { %568 = vmatpush.msrb.mxu3 %v853_v9 }
  0x7a   :  { %569 = vmatpush.msrb.mxu3 %v856_v11 }
  0xac   :  { %v250_v19 = vpop.f32.mrf.mxu0 }
  0xad   :  { %v279_v20 = vpop.f32.mrf.mxu1 }
  0xae   :  { %v280_v25 = vadd.f32 %v279_v20, %v250_v19 }
  0xb1   :  { %v308_v31 = vpop.f32.mrf.mxu2 }
  0xb2   :  { %v309_v32 = vadd.f32 %v308_v31, %v280_v25 }
  0xb4   :  { %v321_v36 = vmul.f32 %v578_v27, %v309_v32  ;;  %v253_v37 = vpop.f32.mrf.mxu0 }
  0xb5   :  { %v282_v38 = vpop.f32.mrf.mxu1 }
  0xb6   :  { %v283_v41 = vadd.f32 %v282_v38, %v253_v37  ;;  %v326_v42 = vadd.f32 %v579_v34, %v321_v36 }
  0xb8   :  { %v861_v44 = vmax.f32 %v326_v42, 0.0 }
  0xb9   :  { %v311_v45 = vpop.f32.mrf.mxu2 }
  0xba   :  { %v312_v46 = vadd.f32 %v311_v45, %v283_v41  ;;  %452 = vmatmul.f32.vlgmr.msrb.gmra.mxu0 %v861_v44  ;;  %v395_v21 = vrot.slane %v861_v44, 1  ;;  %v383_v1 = vrot.slane %v861_v44, 7 }
  0xbc   :  { %v322_v47 = vmul.f32 %v578_v27, %v312_v46  ;;  %v256_v49 = vpop.f32.mrf.mxu0 }
  0xbd   :  { %v285_v50 = vpop.f32.mrf.mxu1 }
  0xbe   :  { %v286_v14 = vadd.f32 %v285_v50, %v256_v49  ;;  %v327_v53 = vadd.f32 %v579_v34, %v322_v47 }
  0xc0   :  { %v331_v18 = vmax.f32 %v327_v53, 0.0 }
  0xc1   :  { %v314_v55 = vpop.f32.mrf.mxu2 }
  0xc2   :  { %v315_v56 = vadd.f32 %v314_v55, %v286_v14  ;;  %455 = vmatmul.f32.gmra.mxu0 %v331_v18  ;;  %v396_v58 = vrot.slane %v331_v18, 1  ;;  %v384_v23 = vrot.slane %v331_v18, 7 }
  0xc4   :  { %v323_v30 = vmul.f32 %v578_v27, %v315_v56  ;;  %v401_v60 = vsel %vm216_vm0, %v395_v21, %v396_v58  ;;  %v259_v33 = vpop.f32.mrf.mxu0  ;;  %v389_v5 = vsel %vm195_vm1, %v383_v1, %v384_v23 }
  0xc5   :  { %v288_v61 = vpop.f32.mrf.mxu1  ;;  %481 = vmatmul.f32.vlgmr.msrb.gmra.mxu1 %v401_v60 }
  0xc6   :  { %v289_v51 = vadd.f32 %v288_v61, %v259_v33  ;;  %v328_v63 = vadd.f32 %v579_v34, %v323_v30 }
  0xc8   :  { %v332_v54 = vmax.f32 %v328_v63, 0.0 }
  0xc9   :  { %v317_v0 = vpop.f32.mrf.mxu2 }
  0xca   :  { %v318_v2 = vadd.f32 %v317_v0, %v289_v51  ;;  %458 = vmatmul.f32.vlgmr.msrb.gmra.mxu2 %v332_v54  ;;  %v397_v57 = vrot.slane %v332_v54, 1  ;;  %v385_v7 = vrot.slane %v332_v54, 7 }
  0xcc   :  { %v324_v4 = vmul.f32 %v578_v27, %v318_v2  ;;  %v400_v6 = vsel %vm216_vm0, %v396_v58, %v397_v57  ;;  %v388_v9 = vsel %vm195_vm1, %v384_v23, %v385_v7 }
  0xcd   :  { %531 = vmatmul.msk.f32.gmra.mxu1 %vm780_vm3, %v400_v6 }
  0xce   :  { %v329_v59 = vadd.f32 %v579_v34, %v324_v4 }
  0xd0   :  { %v333_v62 = vmax.f32 %v329_v59, 0.0 }
  0xd2   :  { %461 = vmatmul.f32.gmra.mxu2 %v333_v62  ;;  %v386_v8 = vrot.slane %v333_v62, 7  ;;  %v398_v11 = vrot.slane %v333_v62, 1 }
  0xd4   :  { %v390_v3 = vsel %vm195_vm1, %v386_v8, %v383_v1  ;;  %v387_v10 = vsel %vm195_vm1, %v385_v7, %v386_v8  ;;  %v399_v12 = vsel %vm216_vm0, %v397_v57, %v398_v11  ;;  %v402_v13 = vsel %vm216_vm0, %v398_v11, %v395_v21 }
  0xd5   :  { %527 = vmatmul.msk.f32.vlgmr.msra.gmra.mxu3 %vm761_vm2, %v390_v3 }
  0xdd   :  { %426 = vmatmul.f32.gmra.mxu3 %v389_v5 }
  0xe5   :  { %529 = vmatmul.msk.f32.gmra.mxu3 %vm804_vm4, %v388_v9 }
  0xed   :  { %432 = vmatmul.f32.gmra.mxu3 %v387_v10 }
  0xf5   :  { %487 = vmatmul.f32.vlgmr.msrb.gmra.mxu3 %v399_v12 }
  0xfd   :  { %533 = vmatmul.msk.f32.gmra.mxu3 %vm815_vm5, %v402_v13 }
 0x137   :  { %v453_v15 = vpop.f32.mrf.mxu0 }
 0x13f   :  { %v456_v25 = vpop.f32.mrf.mxu0 }
 0x142   :  { %v482_v17 = vpop.f32.mrf.mxu1 }
 0x14a   :  { %v485_v27 = vpop.f32.mrf.mxu1 }
 0x14d   :  { %v459_v34 = vpop.f32.mrf.mxu2 }
 0x155   :  { %v462_v38 = vpop.f32.mrf.mxu2 }
 0x158   :  { %v424_v16 = vpop.f32.mrf.mxu3 }
 0x159   :  { %v425_v43 = vadd.f32 %v424_v16, %v723_v28 }
 0x15b   :  { %v454_v19 = vadd.f32 %v453_v15, %v425_v43 }
 0x15d   :  { %v483_v20 = vadd.f32 %v482_v17, %v454_v19 }
 0x15f   :  { %494 = vst [vmem:[#allocation8] sm:$0xff] %v483_v20 }
 0x160   :  { %v427_v22 = vpop.f32.mrf.mxu3 }
 0x161   :  { %v428_v24 = vadd.f32 %v427_v22, %v725_v29 }
 0x163   :  { %v457_v26 = vadd.f32 %v456_v25, %v428_v24 }
 0x165   :  { %v486_v31 = vadd.f32 %v485_v27, %v457_v26 }
 0x167   :  { %495 = vst [vmem:[#allocation8 + $0x8] sm:$0xff] %v486_v31 }
 0x168   :  { %v430_v52 = vpop.f32.mrf.mxu3 }
 0x169   :  { %v431_v48 = vadd.f32 %v430_v52, %v731_v40 }
 0x16b   :  { %v460_v35 = vadd.f32 %v459_v34, %v431_v48 }
 0x170   :  { %v433_v32 = vpop.f32.mrf.mxu3 }
 0x171   :  { %v434_v37 = vadd.f32 %v433_v32, %v729_v39 }
 0x173   :  { %v463_v29 = vadd.f32 %v462_v38, %v434_v37 }
 0x178   :  { %v488_v36 = vpop.f32.mrf.mxu3 }
 0x179   :  { %v489_v28 = vadd.f32 %v488_v36, %v460_v35 }
 0x17b   :  { %496 = vst [vmem:[#allocation8 + $0x10] sm:$0xff] %v489_v28 }
 0x180   :  { %v491_v41 = vpop.f32.mrf.mxu3 }
 0x181   :  { %v492_v42 = vadd.f32 %v491_v41, %v463_v29 }
 0x183   :  { %497 = vst [vmem:[#allocation8 + $0x18] sm:$0xff] %v492_v42 }
 0x184   :  { %510 = dma.vmem_to_hbm [thread:$0]  %s503_s27, 512, %s505_s30, [#allocation4], %s683_s20, %s683_s20, %s684_s21  }
 0x185   :  { %680 = dma.done.wait [#allocation4], 512  }
 0x186   :  { %681 = vsyncadd [#allocation4], 4294966784 }
 0x187   :  { %515 = vsyncpa [#allocation3], 1 }
 0x188   :  { %516 = vsyncpa [#allocation6], 1 }
 0x189   :  { %517 = vsyncpa [#allocation4], 1 }

</bundles_post_ra>
